<compile_context>
chip_gen: v7x
topology: tpu7x:2x2x1
jax: 0.10.0
libtpu: 0.0.40
codegen_flags: <defaults>
</compile_context>

<pallas_src>
import functools

import jax
import jax.numpy as jnp
from jax.experimental import pallas as pl
from jax.experimental.pallas import tpu as pltpu


def _leaky_relu(x, slope=0.01):
    # torch.nn.LeakyReLU default negative_slope = 0.01
    return jnp.where(x > 0, x, slope * x)


def _relu(x):
    return jnp.maximum(x, 0.0)


def _round_up(n, m):
    return -(-n // m) * m


def netcfrsurv_kernel(in_ref, w_ref, b_ref, out_ref, *, d_x, in_p, slab_w):
    R = slab_w
    inp = in_ref[...]                        # (TB, IN_P) f32
    t = inp[:, d_x:d_x + 1]                  # (TB, 1) — treatment/time column

    bias = b_ref[...]                        # (16, SLAB_W)
    b1 = bias[0:1, :]
    b2 = bias[1:2, :]
    b3 = bias[2:3, :]
    b4 = bias[3:4, :]                        # already shifted to PSIT_OFF lanes
    c1 = bias[4:5, :]
    c2 = bias[5:6, :]
    c3 = bias[6:7, :]
    c4 = bias[7:8, :]
    t_onehot = bias[8:9, :]                  # 1.0 at lane PSIT_OFF + enc

    def wblk(k):
        r0 = in_p + k * R                    # static, 8-aligned row offsets
        return w_ref[r0:r0 + R, :]

    f32 = jnp.float32

    # ---- psi = self.psi(x) --------------------------------------------------
    # W1 has a zero row for the t column, so the full input block feeds the MXU.
    h = _leaky_relu(jnp.dot(inp, w_ref[0:in_p, :], preferred_element_type=f32) + b1)
    h = _relu(jnp.dot(h, wblk(0), preferred_element_type=f32) + b2)
    h = _leaky_relu(jnp.dot(h, wblk(1), preferred_element_type=f32) + b3)
    # psi is produced already shifted to lanes [PSIT_OFF, PSIT_OFF+enc); t is
    # inserted at lane PSIT_OFF+enc via the precomputed one-hot (single FMA).
    psi_t = jnp.dot(h, wblk(2), preferred_element_type=f32) + b4 + t * t_onehot

    # ---- phi = self.surv_net(psi_t) -----------------------------------------
    # V1 rows are pre-shifted to PSIT_OFF, so psi_t feeds the MXU directly.
    g = _leaky_relu(jnp.dot(psi_t, wblk(3), preferred_element_type=f32) + c1)
    g = _leaky_relu(jnp.dot(g, wblk(4), preferred_element_type=f32) + c2)
    g = _relu(jnp.dot(g, wblk(5), preferred_element_type=f32) + c3)
    phi = jnp.dot(g, wblk(6), preferred_element_type=f32) + c4

    # phi occupies lanes [0, out_features); psi_t occupies [PSIT_OFF, PSIT_OFF+enc+1);
    # both complements are exact zeros, so one add packs both into one lane-dense slab.
    out_ref[...] = phi + psi_t


def netcfrsurv_forward(inp, params, *, encoded_features, out_features, tb=None):
    """inp: (B, in_features) f32. Returns (phi, psi_t) with exact shapes."""
    B, in_features = inp.shape
    d_x = in_features - 1                    # treatment column MUST be the last column
    enc = encoded_features

    IN_P = _round_up(in_features, 8)
    PSIT_OFF = _round_up(max(out_features, 1), 8)      # psi_t band start lane
    SLAB_W = _round_up(max(PSIT_OFF + enc + 1, 128), 128)
    R = SLAB_W

    # ---- batch tiling (generation-aware policy) -----------------------------
    if tb is None:
        tb = max(8, _round_up(B, 8)) if B <= 512 else 512
    tb = max(8, _round_up(tb, 8))
    Bp = _round_up(B, tb)
    grid = (Bp // tb,)

    inp_p = jnp.pad(inp.astype(jnp.float32),
                    ((0, Bp - B), (0, IN_P - in_features)))

    (w1, b1, w2, b2, w3, b3, w4, b4,
     v1, c1, v2, c2, v3, c3, v4, c4) = params

    def put(slab, a, row_off, col_off=0):
        a = jnp.asarray(a, jnp.float32)
        return slab.at[row_off:row_off + a.shape[0],
                       col_off:col_off + a.shape[1]].set(a)

    # ---- one packed weight slab (all blocks zero-embedded; exact) -----------
    n_rows = IN_P + 7 * R
    w_slab = jnp.zeros((n_rows, SLAB_W), jnp.float32)
    w_slab = put(w_slab, w1, 0)                         # (d_x,32); t row stays zero
    w_slab = put(w_slab, w2, IN_P + 0 * R)              # (32,32)
    w_slab = put(w_slab, w3, IN_P + 1 * R)              # (32,28)
    w_slab = put(w_slab, w4, IN_P + 2 * R, PSIT_OFF)    # (28,enc) -> cols @ PSIT_OFF
    w_slab = put(w_slab, v1, IN_P + 3 * R + PSIT_OFF)   # (enc+1,128) -> rows @ PSIT_OFF
    w_slab = put(w_slab, v2, IN_P + 4 * R)              # (128,128)
    w_slab = put(w_slab, v3, IN_P + 5 * R)              # (128,50)
    w_slab = put(w_slab, v4, IN_P + 6 * R)              # (50,out_features)

    # ---- one packed bias (+ t one-hot) slab ----------------------------------
    b_slab = jnp.zeros((16, SLAB_W), jnp.float32)
    b_slab = put(b_slab, b1, 0)
    b_slab = put(b_slab, b2, 1)
    b_slab = put(b_slab, b3, 2)
    b_slab = put(b_slab, b4, 3, PSIT_OFF)
    b_slab = put(b_slab, c1, 4)
    b_slab = put(b_slab, c2, 5)
    b_slab = put(b_slab, c3, 6)
    b_slab = put(b_slab, c4, 7)
    b_slab = b_slab.at[8, PSIT_OFF + enc].set(1.0)      # t-insertion one-hot

    kernel = functools.partial(netcfrsurv_kernel, d_x=d_x, in_p=IN_P, slab_w=SLAB_W)

    out = pl.pallas_call(
        kernel,
        out_shape=jax.ShapeDtypeStruct((Bp, SLAB_W), jnp.float32),
        grid=grid,
        in_specs=[
            pl.BlockSpec((tb, IN_P), lambda i: (i, 0)),
            pl.BlockSpec((n_rows, SLAB_W), lambda i: (0, 0)),   # grid-invariant
            pl.BlockSpec((16, SLAB_W), lambda i: (0, 0)),       # grid-invariant
        ],
        out_specs=pl.BlockSpec((tb, SLAB_W), lambda i: (i, 0)),
        compiler_params=pltpu.CompilerParams(
            dimension_semantics=("parallel",),
        ),
    )(inp_p, w_slab, b_slab)

    phi = out[:B, :out_features]
    psi_t = out[:B, PSIT_OFF:PSIT_OFF + enc + 1]
    return phi, psi_t


def init_params(key, in_features, encoded_features, out_features):
    """Deterministic synthetic weights matching the nn.Linear shapes.
    Stored as (in, out) so the kernel does x @ W + b."""
    d_x = in_features - 1
    dims_psi = [(d_x, 32), (32, 32), (32, 28), (28, encoded_features)]
    dims_surv = [(encoded_features + 1, 128), (128, 128), (128, 50),
                 (50, out_features)]
    params = []
    for din, dout in dims_psi + dims_surv:
        key, kw, kb = jax.random.split(key, 3)
        scale = 1.0 / jnp.sqrt(jnp.float32(din))
        w = jax.random.uniform(kw, (din, dout), jnp.float32, -scale, scale)
        b = jax.random.uniform(kb, (1, dout), jnp.float32, -scale, scale)
        params += [w, b]
    return tuple(params)


def reference_forward(inp, params, *, encoded_features, out_features):
    """Pure-JAX reference for verification."""
    d_x = inp.shape[1] - 1
    x, t = inp[:, :d_x], inp[:, d_x:]
    (w1, b1, w2, b2, w3, b3, w4, b4,
     v1, c1, v2, c2, v3, c3, v4, c4) = params
    h = _leaky_relu(x @ w1 + b1)
    h = _relu(h @ w2 + b2)
    h = _leaky_relu(h @ w3 + b3)
    psi = h @ w4 + b4
    psi_t = jnp.concatenate([psi, t], axis=1)
    g = _leaky_relu(psi_t @ v1 + c1)
    g = _leaky_relu(g @ v2 + c2)
    g = _relu(g @ v3 + c3)
    phi = g @ v4 + c4
    return phi, psi_t


if __name__ == "__main__":
    # Small, module-consistent shapes.
    B = 16
    in_features = 10          # -> x has 9 columns, t is the last column
    encoded_features = 8
    out_features = 10

    key = jax.random.PRNGKey(0)
    k_in, k_params = jax.random.split(key)
    inp = jax.random.normal(k_in, (B, in_features), jnp.float32)
    params = init_params(k_params, in_features, encoded_features, out_features)

    phi, psi_t = netcfrsurv_forward(
        inp, params, encoded_features=encoded_features,
        out_features=out_features)
    jax.block_until_ready((phi, psi_t))

    phi_ref, psi_t_ref = reference_forward(
        inp, params, encoded_features=encoded_features,
        out_features=out_features)

    assert phi.shape == (B, out_features)
    assert psi_t.shape == (B, encoded_features + 1)
    assert jnp.allclose(phi, phi_ref, atol=1e-5, rtol=1e-5)
    assert jnp.allclose(psi_t, psi_t_ref, atol=1e-5, rtol=1e-5)

    print("KERNEL_OK")
</pallas_src>

<mosaic_0001>
module attributes {stable_mosaic.version = 11 : i64} {
  func.func @netcfrsurv_kernel(%arg0: i32, %arg1: memref<16x16xf32, #tpu.memory_space<vmem>>, %arg2: memref<912x128xf32, #tpu.memory_space<vmem>>, %arg3: memref<16x128xf32, #tpu.memory_space<vmem>>, %arg4: memref<16x128xf32, #tpu.memory_space<vmem>>) attributes {dimension_semantics = [#tpu.dimension_semantics<parallel>], iteration_bounds = array<i64: 1>, scalar_prefetch = 0 : i64, scratch_operands = 0 : i64, tpu.core_type = #tpu.core_type<tc>, window_params = [{transform_indices = @transform_0, window_bounds = array<i64: 16, 16>}, {pipeline_mode = #tpu.pipeline_mode<synchronous>, transform_indices = @transform_1, window_bounds = array<i64: 912, 128>}, {pipeline_mode = #tpu.pipeline_mode<synchronous>, transform_indices = @transform_2, window_bounds = array<i64: 16, 128>}, {transform_indices = @transform_3, window_bounds = array<i64: 16, 128>}]} {
    %c0 = arith.constant 0 : index
    %c0_0 = arith.constant 0 : index
    %0 = vector.load %arg1[%c0, %c0_0] : memref<16x16xf32, #tpu.memory_space<vmem>>, vector<16x16xf32>
    %1 = vector.extract_strided_slice %0 {offsets = [0, 9], sizes = [16, 1], strides = [1, 1]} : vector<16x16xf32> to vector<16x1xf32>
    %c0_1 = arith.constant 0 : index
    %c0_2 = arith.constant 0 : index
    %2 = vector.load %arg3[%c0_1, %c0_2] : memref<16x128xf32, #tpu.memory_space<vmem>>, vector<16x128xf32>
    %3 = vector.extract_strided_slice %2 {offsets = [0, 0], sizes = [1, 128], strides = [1, 1]} : vector<16x128xf32> to vector<1x128xf32>
    %4 = vector.extract_strided_slice %2 {offsets = [1, 0], sizes = [1, 128], strides = [1, 1]} : vector<16x128xf32> to vector<1x128xf32>
    %5 = vector.extract_strided_slice %2 {offsets = [2, 0], sizes = [1, 128], strides = [1, 1]} : vector<16x128xf32> to vector<1x128xf32>
    %6 = vector.extract_strided_slice %2 {offsets = [3, 0], sizes = [1, 128], strides = [1, 1]} : vector<16x128xf32> to vector<1x128xf32>
    %7 = vector.extract_strided_slice %2 {offsets = [4, 0], sizes = [1, 128], strides = [1, 1]} : vector<16x128xf32> to vector<1x128xf32>
    %8 = vector.extract_strided_slice %2 {offsets = [5, 0], sizes = [1, 128], strides = [1, 1]} : vector<16x128xf32> to vector<1x128xf32>
    %9 = vector.extract_strided_slice %2 {offsets = [6, 0], sizes = [1, 128], strides = [1, 1]} : vector<16x128xf32> to vector<1x128xf32>
    %10 = vector.extract_strided_slice %2 {offsets = [7, 0], sizes = [1, 128], strides = [1, 1]} : vector<16x128xf32> to vector<1x128xf32>
    %11 = vector.extract_strided_slice %2 {offsets = [8, 0], sizes = [1, 128], strides = [1, 1]} : vector<16x128xf32> to vector<1x128xf32>
    %c0_3 = arith.constant 0 : index
    %c0_4 = arith.constant 0 : index
    %12 = vector.load %arg2[%c0_3, %c0_4] : memref<912x128xf32, #tpu.memory_space<vmem>>, vector<16x128xf32>
    %cst = arith.constant dense<0.000000e+00> : vector<16x128xf32>
    %13 = tpu.matmul %0, %12, %cst {dimension_numbers = #tpu.dot_dimension_numbers<[1], [0], [0], [1], [0, 0, 1, 1], [], []>} : vector<16x16xf32>, vector<16x128xf32>, vector<16x128xf32> -> vector<16x128xf32>
    %14 = vector.broadcast %3 : vector<1x128xf32> to vector<16x128xf32>
    %15 = arith.addf %13, %14 : vector<16x128xf32>
    %cst_5 = arith.constant 0.000000e+00 : f32
    %16 = vector.broadcast %cst_5 : f32 to vector<16x128xf32>
    %17 = arith.cmpf ogt, %15, %16 : vector<16x128xf32>
    %cst_6 = arith.constant 0.00999999977 : f32
    %18 = vector.broadcast %cst_6 : f32 to vector<16x128xf32>
    %19 = arith.mulf %18, %15 : vector<16x128xf32>
    %20 = arith.select %17, %15, %19 : vector<16x128xi1>, vector<16x128xf32>
    %c16 = arith.constant 16 : index
    %c0_7 = arith.constant 0 : index
    %21 = vector.load %arg2[%c16, %c0_7] : memref<912x128xf32, #tpu.memory_space<vmem>>, vector<128x128xf32>
    %cst_8 = arith.constant dense<0.000000e+00> : vector<16x128xf32>
    %22 = tpu.matmul %20, %21, %cst_8 {dimension_numbers = #tpu.dot_dimension_numbers<[1], [0], [0], [1], [0, 0, 1, 1], [], []>} : vector<16x128xf32>, vector<128x128xf32>, vector<16x128xf32> -> vector<16x128xf32>
    %23 = vector.broadcast %4 : vector<1x128xf32> to vector<16x128xf32>
    %24 = arith.addf %22, %23 : vector<16x128xf32>
    %cst_9 = arith.constant 0.000000e+00 : f32
    %25 = vector.broadcast %cst_9 : f32 to vector<16x128xf32>
    %26 = arith.maximumf %24, %25 : vector<16x128xf32>
    %c144 = arith.constant 144 : index
    %c0_10 = arith.constant 0 : index
    %27 = vector.load %arg2[%c144, %c0_10] : memref<912x128xf32, #tpu.memory_space<vmem>>, vector<128x128xf32>
    %cst_11 = arith.constant dense<0.000000e+00> : vector<16x128xf32>
    %28 = tpu.matmul %26, %27, %cst_11 {dimension_numbers = #tpu.dot_dimension_numbers<[1], [0], [0], [1], [0, 0, 1, 1], [], []>} : vector<16x128xf32>, vector<128x128xf32>, vector<16x128xf32> -> vector<16x128xf32>
    %29 = vector.broadcast %5 : vector<1x128xf32> to vector<16x128xf32>
    %30 = arith.addf %28, %29 : vector<16x128xf32>
    %cst_12 = arith.constant 0.000000e+00 : f32
    %31 = vector.broadcast %cst_12 : f32 to vector<16x128xf32>
    %32 = arith.cmpf ogt, %30, %31 : vector<16x128xf32>
    %cst_13 = arith.constant 0.00999999977 : f32
    %33 = vector.broadcast %cst_13 : f32 to vector<16x128xf32>
    %34 = arith.mulf %33, %30 : vector<16x128xf32>
    %35 = arith.select %32, %30, %34 : vector<16x128xi1>, vector<16x128xf32>
    %c272 = arith.constant 272 : index
    %c0_14 = arith.constant 0 : index
    %36 = vector.load %arg2[%c272, %c0_14] : memref<912x128xf32, #tpu.memory_space<vmem>>, vector<128x128xf32>
    %cst_15 = arith.constant dense<0.000000e+00> : vector<16x128xf32>
    %37 = tpu.matmul %35, %36, %cst_15 {dimension_numbers = #tpu.dot_dimension_numbers<[1], [0], [0], [1], [0, 0, 1, 1], [], []>} : vector<16x128xf32>, vector<128x128xf32>, vector<16x128xf32> -> vector<16x128xf32>
    %38 = vector.broadcast %6 : vector<1x128xf32> to vector<16x128xf32>
    %39 = arith.addf %37, %38 : vector<16x128xf32>
    %40 = vector.broadcast %1 : vector<16x1xf32> to vector<16x128xf32>
    %41 = vector.broadcast %11 : vector<1x128xf32> to vector<16x128xf32>
    %42 = arith.mulf %40, %41 : vector<16x128xf32>
    %43 = arith.addf %39, %42 : vector<16x128xf32>
    %c400 = arith.constant 400 : index
    %c0_16 = arith.constant 0 : index
    %44 = vector.load %arg2[%c400, %c0_16] : memref<912x128xf32, #tpu.memory_space<vmem>>, vector<128x128xf32>
    %cst_17 = arith.constant dense<0.000000e+00> : vector<16x128xf32>
    %45 = tpu.matmul %43, %44, %cst_17 {dimension_numbers = #tpu.dot_dimension_numbers<[1], [0], [0], [1], [0, 0, 1, 1], [], []>} : vector<16x128xf32>, vector<128x128xf32>, vector<16x128xf32> -> vector<16x128xf32>
    %46 = vector.broadcast %7 : vector<1x128xf32> to vector<16x128xf32>
    %47 = arith.addf %45, %46 : vector<16x128xf32>
    %cst_18 = arith.constant 0.000000e+00 : f32
    %48 = vector.broadcast %cst_18 : f32 to vector<16x128xf32>
    %49 = arith.cmpf ogt, %47, %48 : vector<16x128xf32>
    %cst_19 = arith.constant 0.00999999977 : f32
    %50 = vector.broadcast %cst_19 : f32 to vector<16x128xf32>
    %51 = arith.mulf %50, %47 : vector<16x128xf32>
    %52 = arith.select %49, %47, %51 : vector<16x128xi1>, vector<16x128xf32>
    %c528 = arith.constant 528 : index
    %c0_20 = arith.constant 0 : index
    %53 = vector.load %arg2[%c528, %c0_20] : memref<912x128xf32, #tpu.memory_space<vmem>>, vector<128x128xf32>
    %cst_21 = arith.constant dense<0.000000e+00> : vector<16x128xf32>
    %54 = tpu.matmul %52, %53, %cst_21 {dimension_numbers = #tpu.dot_dimension_numbers<[1], [0], [0], [1], [0, 0, 1, 1], [], []>} : vector<16x128xf32>, vector<128x128xf32>, vector<16x128xf32> -> vector<16x128xf32>
    %55 = vector.broadcast %8 : vector<1x128xf32> to vector<16x128xf32>
    %56 = arith.addf %54, %55 : vector<16x128xf32>
    %cst_22 = arith.constant 0.000000e+00 : f32
    %57 = vector.broadcast %cst_22 : f32 to vector<16x128xf32>
    %58 = arith.cmpf ogt, %56, %57 : vector<16x128xf32>
    %cst_23 = arith.constant 0.00999999977 : f32
    %59 = vector.broadcast %cst_23 : f32 to vector<16x128xf32>
    %60 = arith.mulf %59, %56 : vector<16x128xf32>
    %61 = arith.select %58, %56, %60 : vector<16x128xi1>, vector<16x128xf32>
    %c656 = arith.constant 656 : index
    %c0_24 = arith.constant 0 : index
    %62 = vector.load %arg2[%c656, %c0_24] : memref<912x128xf32, #tpu.memory_space<vmem>>, vector<128x128xf32>
    %cst_25 = arith.constant dense<0.000000e+00> : vector<16x128xf32>
    %63 = tpu.matmul %61, %62, %cst_25 {dimension_numbers = #tpu.dot_dimension_numbers<[1], [0], [0], [1], [0, 0, 1, 1], [], []>} : vector<16x128xf32>, vector<128x128xf32>, vector<16x128xf32> -> vector<16x128xf32>
    %64 = vector.broadcast %9 : vector<1x128xf32> to vector<16x128xf32>
    %65 = arith.addf %63, %64 : vector<16x128xf32>
    %cst_26 = arith.constant 0.000000e+00 : f32
    %66 = vector.broadcast %cst_26 : f32 to vector<16x128xf32>
    %67 = arith.maximumf %65, %66 : vector<16x128xf32>
    %c784 = arith.constant 784 : index
    %c0_27 = arith.constant 0 : index
    %68 = vector.load %arg2[%c784, %c0_27] : memref<912x128xf32, #tpu.memory_space<vmem>>, vector<128x128xf32>
    %cst_28 = arith.constant dense<0.000000e+00> : vector<16x128xf32>
    %69 = tpu.matmul %67, %68, %cst_28 {dimension_numbers = #tpu.dot_dimension_numbers<[1], [0], [0], [1], [0, 0, 1, 1], [], []>} : vector<16x128xf32>, vector<128x128xf32>, vector<16x128xf32> -> vector<16x128xf32>
    %70 = vector.broadcast %10 : vector<1x128xf32> to vector<16x128xf32>
    %71 = arith.addf %69, %70 : vector<16x128xf32>
    %72 = arith.addf %71, %43 : vector<16x128xf32>
    %c0_29 = arith.constant 0 : index
    %c0_30 = arith.constant 0 : index
    %73 = vector.load %arg4[%c0_29, %c0_30] : memref<16x128xf32, #tpu.memory_space<vmem>>, vector<16x128xf32>
    tpu.vector_store %arg4[%c0_29, %c0_30], %72 {strides = array<i32>} : memref<16x128xf32, #tpu.memory_space<vmem>>, vector<16x128xf32>,
    return
  }
  func.func @transform_0(%arg0: i32) -> (i32, i32) {
    %c0_i32 = arith.constant 0 : i32
    %c0_i32_0 = arith.constant 0 : i32
    return %arg0, %c0_i32 : i32, i32
  }
  func.func @transform_1(%arg0: i32) -> (i32, i32) {
    %c0_i32 = arith.constant 0 : i32
    %c0_i32_0 = arith.constant 0 : i32
    %c0_i32_1 = arith.constant 0 : i32
    return %c0_i32, %c0_i32_0 : i32, i32
  }
  func.func @transform_2(%arg0: i32) -> (i32, i32) {
    %c0_i32 = arith.constant 0 : i32
    %c0_i32_0 = arith.constant 0 : i32
    %c0_i32_1 = arith.constant 0 : i32
    return %c0_i32, %c0_i32_0 : i32, i32
  }
  func.func @transform_3(%arg0: i32) -> (i32, i32) {
    %c0_i32 = arith.constant 0 : i32
    %c0_i32_0 = arith.constant 0 : i32
    return %arg0, %c0_i32 : i32, i32
  }
}

</mosaic_0001>

<bundles_post_ra>
// kernel: tpu_custom_call.1
= control target key start
LH: loop header
LB: loop body
LE: loop exit
PB: predicated region body
PF: predicated region fallthrough
CT: control target
= control target key end

     0   :  { %8 = vsyncpa [#allocation3], 0  ;;  %s1729_s0 = inlined_call_operand.hbm [shape: f32[16,16], index: 0, kind: input, shape index: {}]   ;;  %s1730_s1 = inlined_call_operand.hbm [shape: f32[912,128], index: 1, kind: input, shape index: {}]   ;;  %s1731_s2 = inlined_call_operand.hbm [shape: f32[16,128], index: 2, kind: input, shape index: {}]   ;;  %s1732_s3 = inlined_call_operand.hbm [shape: f32[16,128], index: 3, kind: output, shape index: {}]  }
   0x1   :  { %9 = vsyncpa [#allocation6], 0 }
   0x2   :  { %10 = vsyncpa [#allocation4], 0  ;;  %s1593_s12 = smov [#allocation5]   ;;  %s1594_s14 = smov [#allocation2]  }
   0x3   :  { %s28_s13 = sshll.u32 %s1593_s12, 4  ;;  %s16_s15 = sshll.u32 %s1594_s14, 4  ;;  %s29_s13 = int_to_ptr.vmem [resolvable:$true] %s28_s13  ;;  %s1620_s15 = int_to_ptr.vmem [resolvable:$true] %s16_s15 }
   0x4   :  { %s1499_s18 = scalar_lea.hbm %s1730_s1, 14592 }
   0x5   :  { %p1500_p0 = scmp.ne.s32.totalorder %s1730_s1, %s1499_s18  ;;  %p1503_p1 = scmp.lt.u32.totalorder %s1499_s18, %s1730_s1 }
   0x7   :  { %p1505_p2 = pnand %p1503_p1, %p1500_p0 }
   0x9   :  { %1508 = shalt.err (!%p1505_p2)
}
   0xa   :  { %s1509_s23 = scalar_lea.vmem %s29_s13, 14592  ;;  %p1514_p4 = scmp.lt.s32.totalorder %s29_s13, %s29_s13 }
   0xb   :  { %p1510_p3 = scmp.ne.s32.totalorder %s29_s13, %s1509_s23  ;;  %p1515_p5 = scmp.lt.s32.totalorder %s1509_s23, %s1509_s23 }
   0xd   :  { %p1516_p6 = por %p1515_p5, %p1514_p4 }
   0xf   :  { %p1517_p7 = pnand %p1516_p6, %p1510_p3 }
  0x11   :  { %1520 = shalt.err (!%p1517_p7)
}
  0x12   :  { %s1595_s24 = smov 128   ;;  %s1596_s25 = smov 8  }
  0x13   :  { %34 = dma.hbm_to_vmem [thread:$0]  %s1730_s1, 14592, %s29_s13, [#allocation6], %s1595_s24, %s1595_s24, %s1596_s25  }
  0x14   :  { %s1521_s30 = scalar_lea.hbm %s1729_s0, 256 }
  0x15   :  { %p1522_p8 = scmp.ne.s32.totalorder %s1729_s0, %s1521_s30  ;;  %p1525_p9 = scmp.lt.u32.totalorder %s1521_s30, %s1729_s0 }
  0x17   :  { %p1527_p10 = pnand %p1525_p9, %p1522_p8 }
  0x19   :  { %1530 = shalt.err (!%p1527_p10)
}
  0x1a   :  { %s1531_s8 = scalar_lea.vmem %s1620_s15, 256  ;;  %p1536_p12 = scmp.lt.s32.totalorder %s1620_s15, %s1620_s15 }
  0x1b   :  { %p1532_p11 = scmp.ne.s32.totalorder %s1620_s15, %s1531_s8  ;;  %p1537_p13 = scmp.lt.s32.totalorder %s1531_s8, %s1531_s8 }
  0x1d   :  { %p1538_p0 = por %p1537_p13, %p1536_p12 }
  0x1f   :  { %p1539_p1 = pnand %p1538_p0, %p1532_p11 }
  0x21   :  { %1542 = shalt.err (!%p1539_p1)
}
  0x22   :  { %22 = dma.hbm_to_vmem [thread:$0]  %s1729_s0, 256, %s1620_s15, [#allocation3], %s1595_s24, %s1595_s24, %s1596_s25  }
  0x23   :  { %s1597_s10 = smov [#allocation7]   ;;  %s1543_s14 = scalar_lea.hbm %s1731_s2, 256 }
  0x24   :  { %s40_s11 = sshll.u32 %s1597_s10, 4  ;;  %p1544_p2 = scmp.ne.s32.totalorder %s1731_s2, %s1543_s14  ;;  %s41_s11 = int_to_ptr.vmem [resolvable:$true] %s40_s11 }
  0x25   :  { %p1547_p3 = scmp.lt.u32.totalorder %s1543_s14, %s1731_s2 }
  0x27   :  { %p1549_p4 = pnand %p1547_p3, %p1544_p2 }
  0x29   :  { %1552 = shalt.err (!%p1549_p4)
}
  0x2a   :  { %s1553_s20 = scalar_lea.vmem %s41_s11, 256  ;;  %p1558_p6 = scmp.lt.s32.totalorder %s41_s11, %s41_s11 }
  0x2b   :  { %p1554_p5 = scmp.ne.s32.totalorder %s41_s11, %s1553_s20  ;;  %p1559_p7 = scmp.lt.s32.totalorder %s1553_s20, %s1553_s20 }
  0x2d   :  { %p1560_p8 = por %p1559_p7, %p1558_p6 }
  0x2f   :  { %p1561_p9 = pnand %p1560_p8, %p1554_p5 }
  0x31   :  { %1564 = shalt.err (!%p1561_p9)
}
  0x32   :  { %46 = dma.hbm_to_vmem [thread:$0]  %s1731_s2, 256, %s41_s11, [#allocation6], %s1595_s24, %s1595_s24, %s1596_s25  }
  0x33   :  { %1587 = dma.done.wait [#allocation3], 256  }
  0x34   :  { %1588 = vsyncadd [#allocation3], 4294967040 }
  0x35   :  { %1589 = dma.done.wait [#allocation6], 14848  }
  0x36   :  { %1590 = vsyncadd [#allocation6], 4294952448  ;;  %vm66_vm0 = vcmask 130048   ;;  %v60_v0 = vld [vmem:[#allocation5] sm:$0xff]  ;;  %v61_v1 = vld [vmem:[#allocation5 + $0x8] sm:$0xff]  ;;  %v62_v50 = vlaneseq  ;;  %s1599_s2 = smov [#allocation8]  }
  0x37   :  { %v1672_v2 = vld [vmem:[#allocation2] sm:$0xff]  ;;  %v1263_v3 = vpack.c.bf16 %v61_v1, %v60_v0  ;;  %v155_v5 = vld [vmem:[#allocation5 + $0x18] sm:$0xff]  ;;  %v156_v7 = vld [vmem:[#allocation5 + $0x20] sm:$0xff]  ;;  %s866_s21 = sshll.u32 %s1599_s2, 4  ;;  %s867_s21 = int_to_ptr.vmem [resolvable:$true] %s866_s21 }
  0x38   :  { %1015 = vmatprep.mubr.msk.f32.mxu0 %vm66_vm0, %v1672_v2  ;;  %v154_v4 = vld [vmem:[#allocation5 + $0x10] sm:$0xff]  ;;  %v157_v8 = vld [vmem:[#allocation5 + $0x28] sm:$0xff]  ;;  %v159_v11 = vld [vmem:[#allocation5 + $0x38] sm:$0xff]  ;;  %v1680_v51 = vshrl.u32 %v62_v50, 7  ;;  %s1565_s22 = scalar_lea.vmem %s867_s21, 256  ;;  %p1570_p11 = scmp.lt.s32.totalorder %s867_s21, %s867_s21 }
  0x39   :  { %v1267_v6 = vpack.c.bf16 %v155_v5, %v154_v4  ;;  %1264 = vmatprep.subr.bf16.mxu0 %v1263_v3  ;;  %v1271_v9 = vpack.c.bf16 %v157_v8, %v156_v7  ;;  %v158_v10 = vld [vmem:[#allocation5 + $0x30] sm:$0xff]  ;;  %v1676_v12 = vld [vmem:[#allocation2 + $0x8] sm:$0xff]  ;;  %v160_v14 = vld [vmem:[#allocation5 + $0x40] sm:$0xff]  ;;  %p1566_p10 = scmp.ne.s32.totalorder %s867_s21, %s1565_s22  ;;  %p1571_p12 = scmp.lt.s32.totalorder %s1565_s22, %s1565_s22 }
  0x3a   :  { %1266 = vmatpush3.bf16.msra.mxu0 %v1263_v3  ;;  %v1275_v13 = vpack.c.bf16 %v159_v11, %v158_v10  ;;  %v161_v15 = vld [vmem:[#allocation5 + $0x48] sm:$0xff]  ;;  %v162_v17 = vld [vmem:[#allocation5 + $0x50] sm:$0xff]  ;;  %v163_v18 = vld [vmem:[#allocation5 + $0x58] sm:$0xff]  ;;  %v64_v52 = vsub.s32 0, %v1680_v51 }
  0x3b   :  { %1268 = vmatprep.subr.bf16.mxu1 %v1267_v6  ;;  %v1279_v16 = vpack.c.bf16 %v161_v15, %v160_v14  ;;  %v1283_v19 = vpack.c.bf16 %v163_v18, %v162_v17  ;;  %v164_v20 = vld [vmem:[#allocation5 + $0x60] sm:$0xff]  ;;  %v165_v21 = vld [vmem:[#allocation5 + $0x68] sm:$0xff]  ;;  %v166_v23 = vld [vmem:[#allocation5 + $0x70] sm:$0xff]  ;;  %p1572_p13 = por %p1571_p12, %p1570_p11 }
  0x3c   :  { %1270 = vmatpush3.bf16.msra.mxu1 %v1267_v6  ;;  %v1287_v22 = vpack.c.bf16 %v165_v21, %v164_v20  ;;  %v167_v24 = vld [vmem:[#allocation5 + $0x78] sm:$0xff]  ;;  %v168_v26 = vld [vmem:[#allocation5 + $0x80] sm:$0xff]  ;;  %v169_v27 = vld [vmem:[#allocation5 + $0x88] sm:$0xff] }
  0x3d   :  { %1272 = vmatprep.subr.bf16.mxu1 %v1271_v9  ;;  %1016 = vmatmul.mubr.msk.f32.vlgmr.msra.gmra.mrb[0].mxu0 %vm66_vm0, %v1676_v12  ;;  %v1291_v25 = vpack.c.bf16 %v167_v24, %v166_v23  ;;  %v1295_v28 = vpack.c.bf16 %v169_v27, %v168_v26  ;;  %v251_v29 = vld [vmem:[#allocation5 + $0x90] sm:$0xff]  ;;  %v252_v30 = vld [vmem:[#allocation5 + $0x98] sm:$0xff]  ;;  %v253_v31 = vld [vmem:[#allocation5 + $0xa0] sm:$0xff]  ;;  %p1573_p0 = pnand %p1572_p13, %p1566_p10 }
  0x3e   :  { %v1299_v32 = vpack.c.bf16 %v252_v30, %v251_v29  ;;  %v254_v33 = vld [vmem:[#allocation5 + $0xa8] sm:$0xff]  ;;  %v255_v35 = vld [vmem:[#allocation5 + $0xb0] sm:$0xff]  ;;  %v256_v36 = vld [vmem:[#allocation5 + $0xb8] sm:$0xff] }
  0x3f   :  { %v1303_v34 = vpack.c.bf16 %v254_v33, %v253_v31  ;;  %v1307_v37 = vpack.c.bf16 %v256_v36, %v255_v35  ;;  %v257_v38 = vld [vmem:[#allocation5 + $0xc0] sm:$0xff]  ;;  %v258_v39 = vld [vmem:[#allocation5 + $0xc8] sm:$0xff]  ;;  %v259_v41 = vld [vmem:[#allocation5 + $0xd0] sm:$0xff] }
  0x40   :  { %1274 = vmatpush3.bf16.msra.mxu1 %v1271_v9  ;;  %1300 = vmatprep.subr.bf16.mxu0 %v1299_v32  ;;  %v1311_v40 = vpack.c.bf16 %v258_v39, %v257_v38  ;;  %v260_v42 = vld [vmem:[#allocation5 + $0xd8] sm:$0xff]  ;;  %v261_v44 = vld [vmem:[#allocation5 + $0xe0] sm:$0xff]  ;;  %v262_v45 = vld [vmem:[#allocation5 + $0xe8] sm:$0xff]  ;;  %v1598_v39 = vmov 9  }
  0x41   :  { %1276 = vmatprep.subr.bf16.mxu1 %v1275_v13  ;;  %1302 = vmatpush3.bf16.msra.mxu0 %v1299_v32  ;;  %v1315_v43 = vpack.c.bf16 %v260_v42, %v259_v41  ;;  %v1319_v46 = vpack.c.bf16 %v262_v45, %v261_v44  ;;  %v263_v47 = vld [vmem:[#allocation5 + $0xf0] sm:$0xff]  ;;  %v264_v48 = vld [vmem:[#allocation5 + $0xf8] sm:$0xff]  ;;  %v265_v63 = vld [vmem:[#allocation5 + $0x100] sm:$0xff] }
  0x42   :  { %1304 = vmatprep.subr.bf16.mxu0 %v1303_v34  ;;  %v1323_v49 = vpack.c.bf16 %v264_v48, %v263_v47  ;;  %v1683_v53 = vld [vmem:[#allocation7] sm:$0xff]  ;;  %v266_v0 = vld [vmem:[#allocation5 + $0x108] sm:$0xff]  ;;  %v353_v4 = vld [vmem:[#allocation5 + $0x118] sm:$0xff]  ;;  %1498 = vset.pattern.permute.xlu0 %v1598_v39 }
  0x43   :  { %v65_v54 = vrot.slane %v1683_v53, %v64_v52  ;;  %v1327_v1 = vpack.c.bf16 %v266_v0, %v265_v63  ;;  %v352_v3 = vld [vmem:[#allocation5 + $0x110] sm:$0xff]  ;;  %v354_v5 = vld [vmem:[#allocation5 + $0x120] sm:$0xff]  ;;  %v355_v7 = vld [vmem:[#allocation5 + $0x128] sm:$0xff]  ;;  %448 = vperm.xlu0 %1498, %v1672_v2  }
  0x44   :  { %1278 = vmatpush3.bf16.msra.mxu1 %v1275_v13  ;;  %v1331_v6 = vpack.c.bf16 %v353_v4, %v352_v3  ;;  %v1335_v8 = vpack.c.bf16 %v355_v7, %v354_v5  ;;  %v356_v9 = vld [vmem:[#allocation5 + $0x130] sm:$0xff]  ;;  %v357_v10 = vld [vmem:[#allocation5 + $0x138] sm:$0xff]  ;;  %v358_v13 = vld [vmem:[#allocation5 + $0x140] sm:$0xff] }
  0x45   :  { %1280 = vmatprep.subr.bf16.mxu1 %v1279_v16  ;;  %1306 = vmatpush3.bf16.msra.mxu0 %v1303_v34  ;;  %v1339_v11 = vpack.c.bf16 %v357_v10, %v356_v9  ;;  %v359_v14 = vld [vmem:[#allocation5 + $0x148] sm:$0xff]  ;;  %v361_v17 = vld [vmem:[#allocation5 + $0x158] sm:$0xff]  ;;  %v364_v30 = vld [vmem:[#allocation5 + $0x170] sm:$0xff] }
  0x46   :  { %1308 = vmatprep.subr.bf16.mxu0 %v1307_v37  ;;  %v1343_v15 = vpack.c.bf16 %v359_v14, %v358_v13  ;;  %v363_v20 = vld [vmem:[#allocation5 + $0x168] sm:$0xff]  ;;  %v365_v31 = vld [vmem:[#allocation5 + $0x178] sm:$0xff]  ;;  %v366_v33 = vld [vmem:[#allocation5 + $0x180] sm:$0xff] }
  0x47   :  { %v1355_v32 = vpack.c.bf16 %v365_v31, %v364_v30  ;;  %v367_v34 = vld [vmem:[#allocation5 + $0x188] sm:$0xff]  ;;  %v463_v36 = vld [vmem:[#allocation5 + $0x190] sm:$0xff]  ;;  %v465_v38 = vld [vmem:[#allocation5 + $0x1a0] sm:$0xff]  ;;  %452 = vperm.xlu0 %1498, %v1676_v12  }
  0x48   :  { %1282 = vmatpush3.bf16.msra.mxu1 %v1279_v16  ;;  %v360_v16 = vld [vmem:[#allocation5 + $0x150] sm:$0xff]  ;;  %v1359_v35 = vpack.c.bf16 %v367_v34, %v366_v33  ;;  %v466_v41 = vld [vmem:[#allocation5 + $0x1a8] sm:$0xff]  ;;  %v468_v44 = vld [vmem:[#allocation5 + $0x1b8] sm:$0xff] }
  0x49   :  { %1284 = vmatprep.subr.bf16.mxu1 %v1283_v19  ;;  %1310 = vmatpush3.bf16.msra.mxu0 %v1307_v37  ;;  %v1347_v18 = vpack.c.bf16 %v361_v17, %v360_v16  ;;  %v464_v37 = vld [vmem:[#allocation5 + $0x198] sm:$0xff]  ;;  %v1367_v42 = vpack.c.bf16 %v466_v41, %v465_v38  ;;  %v470_v47 = vld [vmem:[#allocation5 + $0x1c8] sm:$0xff]  ;;  %v473_v2 = vld [vmem:[#allocation5 + $0x1e0] sm:$0xff] }
  0x4a   :  { %1312 = vmatprep.subr.bf16.mxu0 %v1311_v40  ;;  %v472_v50 = vld [vmem:[#allocation5 + $0x1d8] sm:$0xff]  ;;  %v478_v7 = vld [vmem:[#allocation5 + $0x208] sm:$0xff]  ;;  %v564_v9 = vld [vmem:[#allocation5 + $0x210] sm:$0xff] }
  0x4b   :  { %v565_v10 = vld [vmem:[#allocation5 + $0x218] sm:$0xff]  ;;  %v567_v14 = vld [vmem:[#allocation5 + $0x228] sm:$0xff]  ;;  %v568_v16 = vld [vmem:[#allocation5 + $0x230] sm:$0xff] }
  0x4c   :  { %1286 = vmatpush3.bf16.msra.mxu1 %v1283_v19  ;;  %v362_v19 = vld [vmem:[#allocation5 + $0x160] sm:$0xff]  ;;  %v1395_v13 = vpack.c.bf16 %v565_v10, %v564_v9  ;;  %v569_v17 = vld [vmem:[#allocation5 + $0x238] sm:$0xff] }
  0x4d   :  { %1288 = vmatprep.subr.bf16.mxu1 %v1287_v22  ;;  %1314 = vmatpush3.bf16.msra.mxu0 %v1311_v40  ;;  %v1351_v21 = vpack.c.bf16 %v363_v20, %v362_v19  ;;  %v1363_v40 = vpack.c.bf16 %v464_v37, %v463_v36  ;;  %v570_v19 = vld [vmem:[#allocation5 + $0x240] sm:$0xff]  ;;  %v571_v20 = vld [vmem:[#allocation5 + $0x248] sm:$0xff]  ;;  %v59_v30 = vld [vmem:[#allocation7 + $0x8] sm:$0xff] }
  0x4e   :  { %1316 = vmatprep.subr.bf16.mxu0 %v1315_v43 }
  0x50   :  { %1290 = vmatpush3.bf16.msra.mxu1 %v1287_v22  ;;  %v172_v22 = vsub.s32 1, %v1680_v51 }
  0x51   :  { %1292 = vmatprep.subr.bf16.mxu1 %v1291_v25  ;;  %1318 = vmatpush3.bf16.msra.mxu0 %v1315_v43  ;;  %v467_v43 = vld [vmem:[#allocation5 + $0x1b0] sm:$0xff] }
  0x52   :  { %1320 = vmatprep.subr.bf16.mxu0 %v1319_v46  ;;  %v173_v23 = vrot.slane %v1683_v53, %v172_v22  ;;  %v1371_v45 = vpack.c.bf16 %v468_v44, %v467_v43  ;;  %v572_v22 = vld [vmem:[#allocation5 + $0x250] sm:$0xff]  ;;  %v577_v43 = vld [vmem:[#allocation5 + $0x278] sm:$0xff] }
  0x54   :  { %1294 = vmatpush3.bf16.msra.mxu1 %v1291_v25 }
  0x55   :  { %1296 = vmatprep.subr.bf16.mxu1 %v1295_v28  ;;  %1322 = vmatpush3.bf16.msra.mxu0 %v1319_v46  ;;  %v469_v46 = vld [vmem:[#allocation5 + $0x1c0] sm:$0xff] }
  0x56   :  { %1324 = vmatprep.subr.bf16.mxu0 %v1323_v49  ;;  %v1375_v48 = vpack.c.bf16 %v470_v47, %v469_v46  ;;  %v665_v47 = vld [vmem:[#allocation5 + $0x290] sm:$0xff] }
  0x58   :  { %1298 = vmatpush3.bf16.msra.mxu1 %v1295_v28 }
  0x59   :  { %1326 = vmatpush3.bf16.msra.mxu0 %v1323_v49  ;;  %1332 = vmatprep.subr.bf16.mxu1 %v1331_v6  ;;  %v471_v49 = vld [vmem:[#allocation5 + $0x1d0] sm:$0xff] }
  0x5a   :  { %1328 = vmatprep.subr.bf16.mxu0 %v1327_v1 }
  0x5d   :  { %1330 = vmatpush3.bf16.msra.mxu0 %v1327_v1 }
  0x5e   :  { %1364 = vmatprep.subr.bf16.mxu0 %v1363_v40 }
 0x110   :  { %v1017_v55 = vpop.f32.mrb[0].mxu0 }
 0x111   :  { %v145_v56 = vadd.f32 %v1017_v55, %v65_v54  ;;  %v139_v57 = vpop.f32.mrb[1].mxu0  ;;  %v474_v55 = vld [vmem:[#allocation5 + $0x1e8] sm:$0xff] }
 0x112   :  { %v140_v58 = vadd.f32 %v139_v57, %v65_v54  ;;  %v1379_v54 = vpack.c.bf16 %v472_v50, %v471_v49  ;;  %v475_v57 = vld [vmem:[#allocation5 + $0x1f0] sm:$0xff]  ;;  %v667_v49 = vld [vmem:[#allocation5 + $0x2a0] sm:$0xff] }
 0x113   :  { %v151_v59 = vmul.f32 0.01, %v145_v56  ;;  %vm149_vm2 = vcmp.gt.f32.partialorder %v145_v56, 0.0 }
 0x114   :  { %vm148_vm1 = vcmp.gt.f32.partialorder %v140_v58, 0.0  ;;  %v150_v60 = vmul.f32 0.01, %v140_v58 }
 0x115   :  { %v153_v62 = vsel %vm149_vm2, %v145_v56, %v151_v59  ;;  %v1383_v56 = vpack.c.bf16 %v474_v55, %v473_v2  ;;  %v269_v59 = vsub.s32 2, %v1680_v51  ;;  %v669_v55 = vld [vmem:[#allocation5 + $0x2b0] sm:$0xff] }
 0x116   :  { %v152_v61 = vsel %vm148_vm1, %v140_v58, %v150_v60  ;;  %v476_v58 = vld [vmem:[#allocation5 + $0x1f8] sm:$0xff] }
 0x117   :  { %1050 = vmatprep.mubr.f32.mxu1 %v152_v61  ;;  %v1387_v12 = vpack.c.bf16 %v476_v58, %v475_v57  ;;  %v270_v60 = vrot.slane %v1683_v53, %v269_v59  ;;  %v671_v58 = vld [vmem:[#allocation5 + $0x2c0] sm:$0xff] }
 0x118   :  { %1051 = vmatmul.mubr.f32.vlgmr.msra.gmra.mrb[0].mxu1 %v153_v62 }
 0x119   :  { %1334 = vmatpush3.bf16.msra.mxu1 %v1331_v6  ;;  %v477_v6 = vld [vmem:[#allocation5 + $0x200] sm:$0xff] }
 0x11a   :  { %1336 = vmatprep.subr.bf16.mxu1 %v1335_v8 }
 0x11d   :  { %1338 = vmatpush3.bf16.msra.mxu1 %v1335_v8  ;;  %v1391_v8 = vpack.c.bf16 %v478_v7, %v477_v6 }
 0x11e   :  { %1340 = vmatprep.subr.bf16.mxu1 %v1339_v11 }
 0x121   :  { %1342 = vmatpush3.bf16.msra.mxu1 %v1339_v11  ;;  %v566_v11 = vld [vmem:[#allocation5 + $0x220] sm:$0xff] }
 0x122   :  { %1344 = vmatprep.subr.bf16.mxu1 %v1343_v15 }
 0x125   :  { %1346 = vmatpush3.bf16.msra.mxu1 %v1343_v15  ;;  %v1399_v15 = vpack.c.bf16 %v567_v14, %v566_v11  ;;  %v677_v14 = vld [vmem:[#allocation5 + $0x2f0] sm:$0xff] }
 0x126   :  { %1348 = vmatprep.subr.bf16.mxu1 %v1347_v18 }
 0x129   :  { %1350 = vmatpush3.bf16.msra.mxu1 %v1347_v18  ;;  %v1403_v18 = vpack.c.bf16 %v569_v17, %v568_v16  ;;  %v679_v17 = vld [vmem:[#allocation5 + $0x300] sm:$0xff] }
 0x12a   :  { %1352 = vmatprep.subr.bf16.mxu1 %v1351_v21 }
 0x12d   :  { %1354 = vmatpush3.bf16.msra.mxu1 %v1351_v21  ;;  %v1407_v21 = vpack.c.bf16 %v571_v20, %v570_v19  ;;  %v762_v20 = vld [vmem:[#allocation5 + $0x310] sm:$0xff] }
 0x12e   :  { %1356 = vmatprep.subr.bf16.mxu1 %v1355_v32 }
 0x131   :  { %1358 = vmatpush3.bf16.msra.mxu1 %v1355_v32  ;;  %v458_v32 = vrot.slane %v59_v30, %v64_v52  ;;  %v578_v52 = vld [vmem:[#allocation5 + $0x280] sm:$0xff]  ;;  %v769_v30 = vld [vmem:[#allocation5 + $0x348] sm:$0xff] }
 0x132   :  { %1360 = vmatprep.subr.bf16.mxu1 %v1359_v35 }
 0x135   :  { %1362 = vmatpush3.bf16.msra.mxu1 %v1359_v35 }
 0x136   :  { %1396 = vmatprep.subr.bf16.mxu1 %v1395_v13 }
 0x1eb   :  { %v1052_v24 = vpop.f32.mrb[0].mxu1 }
 0x1ec   :  { %v246_v25 = vadd.f32 %v1052_v24, %v173_v23  ;;  %v240_v26 = vpop.f32.mrb[1].mxu1 }
 0x1ed   :  { %v241_v27 = vadd.f32 %v240_v26, %v173_v23  ;;  %v573_v23 = vld [vmem:[#allocation5 + $0x258] sm:$0xff]  ;;  %v575_v26 = vld [vmem:[#allocation5 + $0x268] sm:$0xff] }
 0x1ee   :  { %v250_v29 = vmax.f32 %v246_v25, 0.0  ;;  %v1411_v24 = vpack.c.bf16 %v573_v23, %v572_v22  ;;  %v574_v25 = vld [vmem:[#allocation5 + $0x260] sm:$0xff] }
 0x1ef   :  { %v249_v28 = vmax.f32 %v241_v27, 0.0  ;;  %v1415_v27 = vpack.c.bf16 %v575_v26, %v574_v25  ;;  %v764_v22 = vld [vmem:[#allocation5 + $0x320] sm:$0xff]  ;;  %v766_v26 = vld [vmem:[#allocation5 + $0x330] sm:$0xff] }
 0x1f1   :  { %1085 = vmatprep.mubr.f32.mxu0 %v249_v28  ;;  %v370_v28 = vsub.s32 3, %v1680_v51 }
 0x1f2   :  { %1086 = vmatmul.mubr.f32.vlgmr.msra.gmra.mrb[2].mxu0 %v250_v29  ;;  %v449_v29 = vpop.permute.xlu0 %448 }
 0x1f3   :  { %1366 = vmatpush3.bf16.msra.mxu0 %v1363_v40  ;;  %v371_v31 = vrot.slane %v1683_v53, %v370_v28  ;;  %v459_v37 = vmul.f32 %v458_v32, %v449_v29  ;;  %v768_v29 = vld [vmem:[#allocation5 + $0x340] sm:$0xff] }
 0x1f4   :  { %1368 = vmatprep.subr.bf16.mxu0 %v1367_v42 }
 0x1f6   :  { %v453_v33 = vpop.permute.xlu0 %452 }
 0x1f7   :  { %1370 = vmatpush3.bf16.msra.mxu0 %v1367_v42  ;;  %v460_v39 = vmul.f32 %v458_v32, %v453_v33  ;;  %v576_v42 = vld [vmem:[#allocation5 + $0x270] sm:$0xff]  ;;  %v771_v33 = vld [vmem:[#allocation5 + $0x358] sm:$0xff] }
 0x1f8   :  { %1372 = vmatprep.subr.bf16.mxu0 %v1371_v45  ;;  %v1419_v44 = vpack.c.bf16 %v577_v43, %v576_v42  ;;  %v770_v32 = vld [vmem:[#allocation5 + $0x350] sm:$0xff]  ;;  %v582_v43 = vsub.s32 5, %v1680_v51 }
 0x1fb   :  { %1374 = vmatpush3.bf16.msra.mxu0 %v1371_v45  ;;  %v579_v45 = vld [vmem:[#allocation5 + $0x288] sm:$0xff] }
 0x1fc   :  { %1376 = vmatprep.subr.bf16.mxu0 %v1375_v48  ;;  %v1423_v46 = vpack.c.bf16 %v579_v45, %v578_v52 }
 0x1ff   :  { %1378 = vmatpush3.bf16.msra.mxu0 %v1375_v48  ;;  %v666_v48 = vld [vmem:[#allocation5 + $0x298] sm:$0xff] }
 0x200   :  { %1380 = vmatprep.subr.bf16.mxu0 %v1379_v54  ;;  %v1427_v50 = vpack.c.bf16 %v666_v48, %v665_v47 }
 0x203   :  { %1382 = vmatpush3.bf16.msra.mxu0 %v1379_v54  ;;  %v668_v54 = vld [vmem:[#allocation5 + $0x2a8] sm:$0xff] }
 0x204   :  { %1384 = vmatprep.subr.bf16.mxu0 %v1383_v56  ;;  %v1431_v2 = vpack.c.bf16 %v668_v54, %v667_v49 }
 0x207   :  { %1386 = vmatpush3.bf16.msra.mxu0 %v1383_v56  ;;  %v670_v56 = vld [vmem:[#allocation5 + $0x2b8] sm:$0xff] }
 0x208   :  { %1388 = vmatprep.subr.bf16.mxu0 %v1387_v12  ;;  %v1435_v57 = vpack.c.bf16 %v670_v56, %v669_v55  ;;  %v777_v55 = vld [vmem:[#allocation5 + $0x388] sm:$0xff] }
 0x20b   :  { %1390 = vmatpush3.bf16.msra.mxu0 %v1387_v12  ;;  %v672_v12 = vld [vmem:[#allocation5 + $0x2c8] sm:$0xff] }
 0x20c   :  { %1392 = vmatprep.subr.bf16.mxu0 %v1391_v8  ;;  %v1439_v59 = vpack.c.bf16 %v672_v12, %v671_v58 }
 0x20f   :  { %1394 = vmatpush3.bf16.msra.mxu0 %v1391_v8 }
 0x210   :  { %1428 = vmatprep.subr.bf16.mxu0 %v1427_v50 }
 0x2c5   :  { %v1087_v61 = vpop.f32.mrb[2].mxu0 }
 0x2c6   :  { %v343_v62 = vadd.f32 %v1087_v61, %v270_v60  ;;  %v337_v63 = vpop.f32.mrb[3].mxu0  ;;  %v674_v61 = vld [vmem:[#allocation5 + $0x2d8] sm:$0xff] }
 0x2c7   :  { %v338_v0 = vadd.f32 %v337_v63, %v270_v60  ;;  %v673_v60 = vld [vmem:[#allocation5 + $0x2d0] sm:$0xff]  ;;  %v675_v63 = vld [vmem:[#allocation5 + $0x2e0] sm:$0xff] }
 0x2c8   :  { %v349_v1 = vmul.f32 0.01, %v343_v62  ;;  %vm347_vm3 = vcmp.gt.f32.partialorder %v343_v62, 0.0 }
 0x2c9   :  { %v348_v3 = vmul.f32 0.01, %v338_v0  ;;  %vm346_vm4 = vcmp.gt.f32.partialorder %v338_v0, 0.0 }
 0x2ca   :  { %v351_v5 = vsel %vm347_vm3, %v343_v62, %v349_v1  ;;  %v1443_v62 = vpack.c.bf16 %v674_v61, %v673_v60 }
 0x2cb   :  { %v350_v4 = vsel %vm346_vm4, %v338_v0, %v348_v3  ;;  %v676_v0 = vld [vmem:[#allocation5 + $0x2e8] sm:$0xff]  ;;  %v481_v3 = vsub.s32 4, %v1680_v51 }
 0x2cc   :  { %1120 = vmatprep.mubr.f32.mxu1 %v350_v4  ;;  %v1447_v1 = vpack.c.bf16 %v676_v0, %v675_v63  ;;  %v780_v0 = vsub.s32 7, %v1680_v51 }
 0x2cd   :  { %1121 = vmatmul.mubr.f32.vlgmr.msra.gmra.mrb[2].mxu1 %v351_v5  ;;  %v482_v4 = vrot.slane %v1683_v53, %v481_v3 }
 0x2ce   :  { %1398 = vmatpush3.bf16.msra.mxu1 %v1395_v13 }
 0x2cf   :  { %1400 = vmatprep.subr.bf16.mxu1 %v1399_v15 }
 0x2d2   :  { %1402 = vmatpush3.bf16.msra.mxu1 %v1399_v15  ;;  %v678_v15 = vld [vmem:[#allocation5 + $0x2f8] sm:$0xff] }
 0x2d3   :  { %1404 = vmatprep.subr.bf16.mxu1 %v1403_v18  ;;  %v1451_v16 = vpack.c.bf16 %v678_v15, %v677_v14 }
 0x2d6   :  { %1406 = vmatpush3.bf16.msra.mxu1 %v1403_v18  ;;  %v680_v18 = vld [vmem:[#allocation5 + $0x308] sm:$0xff] }
 0x2d7   :  { %1408 = vmatprep.subr.bf16.mxu1 %v1407_v21  ;;  %v1455_v19 = vpack.c.bf16 %v680_v18, %v679_v17 }
 0x2da   :  { %1410 = vmatpush3.bf16.msra.mxu1 %v1407_v21  ;;  %v763_v21 = vld [vmem:[#allocation5 + $0x318] sm:$0xff] }
 0x2db   :  { %1412 = vmatprep.subr.bf16.mxu1 %v1411_v24  ;;  %v1459_v23 = vpack.c.bf16 %v763_v21, %v762_v20 }
 0x2de   :  { %1414 = vmatpush3.bf16.msra.mxu1 %v1411_v24  ;;  %v765_v24 = vld [vmem:[#allocation5 + $0x328] sm:$0xff] }
 0x2df   :  { %1416 = vmatprep.subr.bf16.mxu1 %v1415_v27  ;;  %v1463_v25 = vpack.c.bf16 %v765_v24, %v764_v22 }
 0x2e2   :  { %1418 = vmatpush3.bf16.msra.mxu1 %v1415_v27  ;;  %v767_v27 = vld [vmem:[#allocation5 + $0x338] sm:$0xff] }
 0x2e3   :  { %1420 = vmatprep.subr.bf16.mxu1 %v1419_v44  ;;  %v1467_v28 = vpack.c.bf16 %v767_v27, %v766_v26 }
 0x2e6   :  { %1422 = vmatpush3.bf16.msra.mxu1 %v1419_v44  ;;  %v583_v44 = vrot.slane %v1683_v53, %v582_v43 }
 0x2e7   :  { %1424 = vmatprep.subr.bf16.mxu1 %v1423_v46 }
 0x2ea   :  { %1426 = vmatpush3.bf16.msra.mxu1 %v1423_v46 }
 0x2eb   :  { %1460 = vmatprep.subr.bf16.mxu1 %v1459_v23 }
 0x3a0   :  { %v1122_v34 = vpop.f32.mrb[2].mxu1 }
 0x3a1   :  { %v444_v35 = vadd.f32 %v1122_v34, %v371_v31  ;;  %v438_v36 = vpop.f32.mrb[3].mxu1  ;;  %v1475_v34 = vpack.c.bf16 %v771_v33, %v770_v32 }
 0x3a2   :  { %v439_v38 = vadd.f32 %v438_v36, %v371_v31  ;;  %v1471_v31 = vpack.c.bf16 %v769_v30, %v768_v29  ;;  %v773_v36 = vld [vmem:[#allocation5 + $0x368] sm:$0xff] }
 0x3a3   :  { %v1700_v41 = vadd.f32 %v460_v39, %v444_v35  ;;  %v772_v35 = vld [vmem:[#allocation5 + $0x360] sm:$0xff]  ;;  %v775_v39 = vld [vmem:[#allocation5 + $0x378] sm:$0xff] }
 0x3a4   :  { %v1698_v40 = vadd.f32 %v459_v37, %v439_v38  ;;  %v1479_v37 = vpack.c.bf16 %v773_v36, %v772_v35  ;;  %v774_v38 = vld [vmem:[#allocation5 + $0x370] sm:$0xff] }
 0x3a5   :  { %v1483_v42 = vpack.c.bf16 %v775_v39, %v774_v38 }
 0x3a6   :  { %1155 = vmatprep.mubr.f32.mxu0 %v1698_v40 }
 0x3a7   :  { %1156 = vmatmul.mubr.f32.vlgmr.msra.gmra.mrb[4].mxu0 %v1700_v41 }
 0x3a8   :  { %1430 = vmatpush3.bf16.msra.mxu0 %v1427_v50 }
 0x3a9   :  { %1432 = vmatprep.subr.bf16.mxu0 %v1431_v2 }
 0x3ac   :  { %1434 = vmatpush3.bf16.msra.mxu0 %v1431_v2  ;;  %v776_v2 = vld [vmem:[#allocation5 + $0x380] sm:$0xff] }
 0x3ad   :  { %1436 = vmatprep.subr.bf16.mxu0 %v1435_v57  ;;  %v1487_v56 = vpack.c.bf16 %v777_v55, %v776_v2 }
 0x3b0   :  { %1438 = vmatpush3.bf16.msra.mxu0 %v1435_v57  ;;  %v683_v57 = vsub.s32 6, %v1680_v51 }
 0x3b1   :  { %1440 = vmatprep.subr.bf16.mxu0 %v1439_v59 }
 0x3b2   :  { %v684_v58 = vrot.slane %v1683_v53, %v683_v57 }
 0x3b4   :  { %1442 = vmatpush3.bf16.msra.mxu0 %v1439_v59 }
 0x3b5   :  { %1444 = vmatprep.subr.bf16.mxu0 %v1443_v62 }
 0x3b8   :  { %1446 = vmatpush3.bf16.msra.mxu0 %v1443_v62 }
 0x3b9   :  { %1448 = vmatprep.subr.bf16.mxu0 %v1447_v1 }
 0x3bc   :  { %1450 = vmatpush3.bf16.msra.mxu0 %v1447_v1  ;;  %v781_v1 = vrot.slane %v1683_v53, %v780_v0 }
 0x3bd   :  { %1452 = vmatprep.subr.bf16.mxu0 %v1451_v16 }
 0x3c0   :  { %1454 = vmatpush3.bf16.msra.mxu0 %v1451_v16 }
 0x3c1   :  { %1456 = vmatprep.subr.bf16.mxu0 %v1455_v19 }
 0x3c4   :  { %1458 = vmatpush3.bf16.msra.mxu0 %v1455_v19 }
 0x47a   :  { %v1157_v5 = vpop.f32.mrb[4].mxu0 }
 0x47b   :  { %v555_v6 = vadd.f32 %v1157_v5, %v482_v4  ;;  %v549_v7 = vpop.f32.mrb[5].mxu0 }
 0x47c   :  { %v550_v8 = vadd.f32 %v549_v7, %v482_v4 }
 0x47d   :  { %v561_v9 = vmul.f32 0.01, %v555_v6  ;;  %vm559_vm5 = vcmp.gt.f32.partialorder %v555_v6, 0.0 }
 0x47e   :  { %v560_v10 = vmul.f32 0.01, %v550_v8  ;;  %vm558_vm6 = vcmp.gt.f32.partialorder %v550_v8, 0.0 }
 0x47f   :  { %v563_v13 = vsel %vm559_vm5, %v555_v6, %v561_v9 }
 0x480   :  { %v562_v11 = vsel %vm558_vm6, %v550_v8, %v560_v10 }
 0x481   :  { %1190 = vmatprep.mubr.f32.mxu1 %v562_v11 }
 0x482   :  { %1191 = vmatmul.mubr.f32.vlgmr.msra.gmra.mrb[4].mxu1 %v563_v13 }
 0x483   :  { %1462 = vmatpush3.bf16.msra.mxu1 %v1459_v23 }
 0x484   :  { %1464 = vmatprep.subr.bf16.mxu1 %v1463_v25 }
 0x487   :  { %1466 = vmatpush3.bf16.msra.mxu1 %v1463_v25 }
 0x488   :  { %1468 = vmatprep.subr.bf16.mxu1 %v1467_v28 }
 0x48b   :  { %1470 = vmatpush3.bf16.msra.mxu1 %v1467_v28 }
 0x48c   :  { %1472 = vmatprep.subr.bf16.mxu1 %v1471_v31 }
 0x48f   :  { %1474 = vmatpush3.bf16.msra.mxu1 %v1471_v31 }
 0x490   :  { %1476 = vmatprep.subr.bf16.mxu1 %v1475_v34 }
 0x493   :  { %1478 = vmatpush3.bf16.msra.mxu1 %v1475_v34 }
 0x494   :  { %1480 = vmatprep.subr.bf16.mxu1 %v1479_v37 }
 0x497   :  { %1482 = vmatpush3.bf16.msra.mxu1 %v1479_v37 }
 0x498   :  { %1484 = vmatprep.subr.bf16.mxu1 %v1483_v42 }
 0x49b   :  { %1486 = vmatpush3.bf16.msra.mxu1 %v1483_v42 }
 0x49c   :  { %1488 = vmatprep.subr.bf16.mxu1 %v1487_v56 }
 0x49f   :  { %1490 = vmatpush3.bf16.msra.mxu1 %v1487_v56 }
 0x555   :  { %v1192_v52 = vpop.f32.mrb[4].mxu1 }
 0x556   :  { %v656_v45 = vadd.f32 %v1192_v52, %v583_v44  ;;  %v650_v46 = vpop.f32.mrb[5].mxu1 }
 0x557   :  { %v651_v47 = vadd.f32 %v650_v46, %v583_v44 }
 0x558   :  { %v662_v48 = vmul.f32 0.01, %v656_v45  ;;  %vm660_vm7 = vcmp.gt.f32.partialorder %v656_v45, 0.0 }
 0x559   :  { %v661_v49 = vmul.f32 0.01, %v651_v47  ;;  %vm659_vm8 = vcmp.gt.f32.partialorder %v651_v47, 0.0 }
 0x55a   :  { %v664_v54 = vsel %vm660_vm7, %v656_v45, %v662_v48 }
 0x55b   :  { %v663_v50 = vsel %vm659_vm8, %v651_v47, %v661_v49 }
 0x55c   :  { %1225 = vmatprep.mubr.f32.mxu0 %v663_v50 }
 0x55d   :  { %1226 = vmatmul.mubr.f32.vlgmr.msra.gmra.mrb[6].mxu0 %v664_v54 }
 0x630   :  { %v1227_v12 = vpop.f32.mrb[6].mxu0 }
 0x631   :  { %v757_v59 = vadd.f32 %v1227_v12, %v684_v58  ;;  %v751_v60 = vpop.f32.mrb[7].mxu0 }
 0x632   :  { %v752_v61 = vadd.f32 %v751_v60, %v684_v58 }
 0x633   :  { %v761_v63 = vmax.f32 %v757_v59, 0.0 }
 0x634   :  { %v760_v62 = vmax.f32 %v752_v61, 0.0 }
 0x636   :  { %1260 = vmatprep.mubr.f32.mxu1 %v760_v62 }
 0x637   :  { %1261 = vmatmul.mubr.f32.vlgmr.msra.gmra.mrb[6].mxu1 %v761_v63 }
 0x70a   :  { %v1262_v3 = vpop.f32.mrb[6].mxu1 }
 0x70b   :  { %v854_v4 = vadd.f32 %v1262_v3, %v781_v1  ;;  %v848_v5 = vpop.f32.mrb[7].mxu1 }
 0x70c   :  { %v849_v6 = vadd.f32 %v848_v5, %v781_v1 }
 0x70d   :  { %v858_v7 = vadd.f32 %v854_v4, %v1700_v41 }
 0x70e   :  { %v857_v8 = vadd.f32 %v849_v6, %v1698_v40 }
 0x70f   :  { %860 = vst [vmem:[#allocation8 + $0x8] sm:$0xff] %v858_v7 }
 0x710   :  { %859 = vst [vmem:[#allocation8] sm:$0xff] %v857_v8 }
 0x711   :  { %1576 = shalt.err (!%p1573_p0)
}
 0x712   :  { %s1577_s27 = scalar_lea.hbm %s1732_s3, 256 }
 0x713   :  { %p1578_p1 = scmp.ne.s32.totalorder %s1732_s3, %s1577_s27  ;;  %p1581_p2 = scmp.lt.u32.totalorder %s1577_s27, %s1732_s3 }
 0x715   :  { %p1583_p3 = pnand %p1581_p2, %p1578_p1 }
 0x717   :  { %1586 = shalt.err (!%p1583_p3)
}
 0x718   :  { %872 = dma.vmem_to_hbm [thread:$0]  %s867_s21, 256, %s1732_s3, [#allocation4], %s1595_s24, %s1595_s24, %s1596_s25  }
 0x719   :  { %1591 = dma.done.wait [#allocation4], 256  }
 0x71a   :  { %1592 = vsyncadd [#allocation4], 4294967040 }
 0x71b   :  { %876 = vsyncpa [#allocation3], 1 }
 0x71c   :  { %877 = vsyncpa [#allocation6], 1 }
 0x71d   :  { %878 = vsyncpa [#allocation4], 1 }

</bundles_post_ra>
